<compile_context>
chip_gen: v5e
topology: v5e:2x2
jax: 0.10.0
libtpu: 0.0.40
codegen_flags: <defaults>
</compile_context>

<pallas_src>
import math

import jax
import jax.numpy as jnp
from jax.experimental import pallas as pl
from jax.experimental.pallas import tpu as pltpu


def _copy_kernel(x_ref, o_ref):
    # Identity copy of the current (tb, tf) tile.
    o_ref[...] = x_ref[...]


def _choose_tiles(b, f, itemsize):
    """Pick a lane-dense, VMEM-friendly (tb, tf) tile for a (b, f) slab."""
    # Feature (lane) tile: a multiple of 128, as wide as possible (up to 2048
    # lanes); if F is not a multiple of 128, fall back to the full extent
    # (block dim == array dim satisfies the layout constraint).
    if f % 128 == 0:
        tf = min(f, 2048)
    else:
        tf = f
    # Batch (sublane) tile: a multiple of 8, else the full batch.
    if b % 8 == 0:
        tb = min(b, 256)
    else:
        tb = b

    # Keep each block <= ~2 MiB so (in + out) x double buffering stays well
    # under the smallest scoped-VMEM default (16 MiB on v5e).
    max_block_bytes = 2 * 1024 * 1024
    while tb * tf * itemsize > max_block_bytes and tb > 8 and (tb // 2) % 8 == 0:
        tb //= 2
    while tb * tf * itemsize > max_block_bytes and tf > 128 and (tf // 2) % 128 == 0:
        tf //= 2
    return tb, tf


def _pallas_identity_copy(x2d):
    """Tiled identity copy of a (B, F) slab through a Pallas kernel."""
    b, f = x2d.shape
    tb, tf = _choose_tiles(b, f, x2d.dtype.itemsize)

    grid = (pl.cdiv(b, tb), pl.cdiv(f, tf))
    return pl.pallas_call(
        _copy_kernel,
        out_shape=jax.ShapeDtypeStruct((b, f), x2d.dtype),
        grid_spec=pl.GridSpec(
            grid=grid,
            in_specs=[pl.BlockSpec((tb, tf), lambda i, j: (i, j))],
            out_specs=pl.BlockSpec((tb, tf), lambda i, j: (i, j)),
        ),
        compiler_params=pltpu.CompilerParams(
            dimension_semantics=("parallel", "parallel")),
        # Output reuses the input HBM buffer (identity copy => safe per-block).
        input_output_aliases={0: 0},
    )(x2d)


def reshape_forward(x, shape, use_pallas_copy=False):
    """Equivalent of Reshape(shape)(x) in PyTorch.

    Args:
      x: array of shape (B, ...).
      shape: tuple of ints, per-sample target shape (batch dim excluded).
      use_pallas_copy: if True, stage the data through a tiled Pallas identity
        copy (otherwise the reshape is pure metadata -- the recommended path).

    Returns:
      array of shape (B, *shape), same dtype as x.
    """
    b = x.shape[0]
    feat_in = math.prod(x.shape[1:])
    feat_out = math.prod(shape)
    assert feat_in == feat_out, (
        f"cannot reshape {x.shape[1:]} -> {shape}: element count mismatch")

    if not use_pallas_copy:
        # Reshape is metadata-only under jit -- the op is free.
        return x.reshape(b, *shape)

    # Optional staging path: flatten (metadata), tiled Pallas copy, re-view.
    x2d = x.reshape(b, feat_in)
    out2d = _pallas_identity_copy(x2d)
    return out2d.reshape(b, *shape)


class ReshapePallas:
    """Mirror of the PyTorch Reshape module (no parameters)."""

    def __init__(self, shape, use_pallas_copy=False):
        self.shape = tuple(shape)
        self.use_pallas_copy = use_pallas_copy

    def __call__(self, x):
        return reshape_forward(x, self.shape, self.use_pallas_copy)


if __name__ == "__main__":
    key = jax.random.PRNGKey(0)
    # Input consistent with an NCHW conv activation: (batch=2, C=4, H=16, W=16)
    x = jax.random.normal(key, (2, 4, 16, 16), dtype=jnp.float32)

    # Target per-sample shape ignoring the batch dim: (64, 16)  (4*16*16 = 1024)
    target_shape = (64, 16)
    y_ref = x.reshape(x.shape[0], *target_shape)

    # 1) Pallas staging-copy path (exercises the kernel).
    mod_copy = ReshapePallas(target_shape, use_pallas_copy=True)
    y = jax.block_until_ready(mod_copy(x))
    assert y.shape == (2, 64, 16), y.shape
    assert y.dtype == x.dtype
    assert jnp.array_equal(y, y_ref)

    # 2) Recommended zero-cost metadata path (default).
    mod_fast = ReshapePallas(target_shape)
    y_fast = jax.block_until_ready(mod_fast(x))
    assert y_fast.shape == (2, 64, 16)
    assert jnp.array_equal(y_fast, y_ref)

    print("KERNEL_OK")
</pallas_src>

<mosaic_0001>
module attributes {stable_mosaic.version = 11 : i64} {
  func.func @_copy_kernel(%arg0: i32, %arg1: i32, %arg2: memref<2x1024xf32, #tpu.memory_space<vmem>>, %arg3: memref<2x1024xf32, #tpu.memory_space<vmem>>) attributes {dimension_semantics = [#tpu.dimension_semantics<parallel>, #tpu.dimension_semantics<parallel>], iteration_bounds = array<i64: 1, 1>, scalar_prefetch = 0 : i64, scratch_operands = 0 : i64, tpu.core_type = #tpu.core_type<tc>, window_params = [{transform_indices = @transform_0, window_bounds = array<i64: 2, 1024>}, {transform_indices = @transform_1, window_bounds = array<i64: 2, 1024>}]} {
    %c0 = arith.constant 0 : index
    %c0_0 = arith.constant 0 : index
    %0 = vector.load %arg2[%c0, %c0_0] : memref<2x1024xf32, #tpu.memory_space<vmem>>, vector<2x1024xf32>
    %c0_1 = arith.constant 0 : index
    %c0_2 = arith.constant 0 : index
    %1 = vector.load %arg3[%c0_1, %c0_2] : memref<2x1024xf32, #tpu.memory_space<vmem>>, vector<2x1024xf32>
    tpu.vector_store %arg3[%c0_1, %c0_2], %0 {strides = array<i32>} : memref<2x1024xf32, #tpu.memory_space<vmem>>, vector<2x1024xf32>,
    return
  }
  func.func @transform_0(%arg0: i32, %arg1: i32) -> (i32, i32) {
    %c0_i32 = arith.constant 0 : i32
    return %arg0, %arg1 : i32, i32
  }
  func.func @transform_1(%arg0: i32, %arg1: i32) -> (i32, i32) {
    %c0_i32 = arith.constant 0 : i32
    return %arg0, %arg1 : i32, i32
  }
}

</mosaic_0001>

<bundles_post_ra>
// kernel: tpu_custom_call.1
= control target key start
LH: loop header
LB: loop body
LE: loop exit
PB: predicated region body
PF: predicated region fallthrough
CT: control target
= control target key end

     0   :  { %6 = vsyncpa [#allocation3], 0  ;;  %s116_s0 = inlined_call_operand.hbm [shape: f32[2,1024], index: 0, kind: input, shape index: {}, may-alias: {0,1}]   ;;  %s117_s1 = inlined_call_operand.hbm [shape: f32[2,1024], index: 1, kind: output, shape index: {}, may-alias: {0,1}]  }
   0x1   :  { %7 = vsyncpa [#allocation4], 0  ;;  %s13_s8 = sshll.u32 %s116_s0, 4  ;;  %s98_s9 = smov [#allocation2]   ;;  %s14_s8 = int_to_ptr.hbm [resolvable:$true] %s13_s8 }
   0x2   :  { %s15_s10 = sshll.u32 %s98_s9, 4  ;;  %s16_s10 = int_to_ptr.vmem [resolvable:$true] %s15_s10 }
   0x3   :  { %18 = dma.hbm_to_vmem [thread:$0]  %s14_s8, 256, %s16_s10, [#allocation3]  }
   0x4   :  { %94 = dma.done.wait [#allocation3], 256  }
   0x5   :  { %95 = vsyncadd [#allocation3], 4294967040  ;;  %s99_s11 = smov [#allocation5]   ;;  %s34_s15 = sshll.u32 %s117_s1, 4  ;;  %v23_v0 = vld [vmem:[#allocation2] sm:$0xff]  ;;  %v24_v1 = vld [vmem:[#allocation2 + $0x8] sm:$0xff]  ;;  %s35_s15 = int_to_ptr.hbm [resolvable:$true] %s34_s15 }
   0x6   :  { %s32_s12 = sshll.u32 %s99_s11, 4  ;;  %25 = vst [vmem:[#allocation5] sm:$0xff] %v23_v0  ;;  %s33_s12 = int_to_ptr.vmem [resolvable:$true] %s32_s12 }
   0x7   :  { %26 = vst [vmem:[#allocation5 + $0x8] sm:$0xff] %v24_v1 }
   0x8   :  { %37 = dma.vmem_to_hbm [thread:$0]  %s33_s12, 256, %s35_s15, [#allocation4]  }
   0x9   :  { %96 = dma.done.wait [#allocation4], 256  }
   0xa   :  { %97 = vsyncadd [#allocation4], 4294967040 }
   0xb   :  { %42 = vsyncpa [#allocation3], 1 }
   0xc   :  { %43 = vsyncpa [#allocation4], 1 }

</bundles_post_ra>
